<compile_context>
chip_gen: v6e
topology: v6e:2x2x1
jax: 0.10.0
libtpu: 0.0.40
codegen_flags: <defaults>
</compile_context>

<pallas_src>
import functools
import math

import jax
import jax.numpy as jnp
from jax.experimental import pallas as pl
from jax.experimental.pallas import tpu as pltpu


# ----------------------------------------------------------------------------
# Helpers
# ----------------------------------------------------------------------------
def _whole(shape):
    """Full-array BlockSpec whose block index is constant in every grid axis."""
    n = len(shape)
    return pl.BlockSpec(shape, lambda *_args, _n=n: (0,) * _n)


def _single_call(kernel, out_shape, *arrays):
    return pl.pallas_call(
        kernel,
        out_shape=out_shape,
        grid=(1,),
        in_specs=[_whole(a.shape) for a in arrays],
        out_specs=_whole(out_shape.shape),
    )(*arrays)


def _layernorm(h, g, b, eps):
    mu = jnp.mean(h, axis=-1, keepdims=True)
    var = jnp.mean(jnp.square(h - mu), axis=-1, keepdims=True)
    return (h - mu) * jax.lax.rsqrt(var + eps) * g + b


# ----------------------------------------------------------------------------
# Kernel 1: embedding LayerNorm + factorized projection (E -> H), fused
# ----------------------------------------------------------------------------
def _embed_kernel(emb_ref, g_ref, b_ref, w_ref, pb_ref, o_ref, *, eps):
    n = _layernorm(emb_ref[...].astype(jnp.float32), g_ref[...], b_ref[...], eps)
    y = jnp.dot(n.astype(jnp.bfloat16), w_ref[...],
                preferred_element_type=jnp.float32) + pb_ref[...]
    o_ref[...] = y.astype(o_ref.dtype)


# ----------------------------------------------------------------------------
# Kernel 2: one full ALBERT encoder layer; the layer count is the grid axis.
#           Residual stream carried in VMEM scratch; weights fetched once.
# ----------------------------------------------------------------------------
def _encoder_layer_kernel(x0_ref, mask_ref, qkv_w_ref, qkv_b_ref,
                          ao_w_ref, ao_b_ref, aln_g_ref, aln_b_ref,
                          ffn_w_ref, ffn_b_ref, fo_w_ref, fo_b_ref,
                          fln_g_ref, fln_b_ref,
                          out_ref, x_ref,
                          *, B, S, nH, dh, eps):
    H = nH * dh
    layer = pl.program_id(0)

    @pl.when(layer == 0)
    def _():
        x_ref[...] = x0_ref[...].astype(jnp.float32)

    x = x_ref[...]                                       # [B*S, H] f32 residual stream
    add_mask = mask_ref[...]                             # [B, 1, S] additive (-1e4 pads)

    # ---- fused Q/K/V projection (1/sqrt(dh) folded into Q weights at trace time) ----
    qkv = jnp.dot(x.astype(jnp.bfloat16), qkv_w_ref[...],
                  preferred_element_type=jnp.float32) + qkv_b_ref[...]     # [B*S, 3H]

    # ---- per-head attention, entirely in VMEM (static unroll over heads) ----
    head_outs = []
    for h in range(nH):
        qh = qkv[:, h * dh:(h + 1) * dh].astype(jnp.bfloat16).reshape(B, S, dh)
        kh = qkv[:, H + h * dh:H + (h + 1) * dh].astype(jnp.bfloat16).reshape(B, S, dh)
        vh = qkv[:, 2 * H + h * dh:2 * H + (h + 1) * dh].astype(jnp.bfloat16).reshape(B, S, dh)
        s = jnp.einsum("bqd,bkd->bqk", qh, kh,
                       preferred_element_type=jnp.float32) + add_mask      # [B, S, S]
        m = jnp.max(s, axis=-1, keepdims=True)
        e = jnp.exp(s - m)
        p = e * pl.reciprocal(jnp.sum(e, axis=-1, keepdims=True), approx=True)
        oh = jnp.einsum("bqk,bkd->bqd", p.astype(jnp.bfloat16), vh,
                        preferred_element_type=jnp.float32)                # [B, S, dh]
        head_outs.append(oh.reshape(B * S, dh))
    attn = jnp.concatenate(head_outs, axis=-1)                             # [B*S, H]

    # ---- attention output projection + residual + LayerNorm ----
    ao = jnp.dot(attn.astype(jnp.bfloat16), ao_w_ref[...],
                 preferred_element_type=jnp.float32) + ao_b_ref[...]
    x = _layernorm(ao + x, aln_g_ref[...], aln_b_ref[...], eps)

    # ---- FFN (gelu_new / tanh approximation, as in ALBERT configs) ----
    h1 = jnp.dot(x.astype(jnp.bfloat16), ffn_w_ref[...],
                 preferred_element_type=jnp.float32) + ffn_b_ref[...]
    h1 = jax.nn.gelu(h1, approximate=True)
    h2 = jnp.dot(h1.astype(jnp.bfloat16), fo_w_ref[...],
                 preferred_element_type=jnp.float32) + fo_b_ref[...]
    x = _layernorm(h2 + x, fln_g_ref[...], fln_b_ref[...], eps)

    x_ref[...] = x

    @pl.when(layer == pl.num_programs(0) - 1)
    def _():
        out_ref[...] = x.astype(out_ref.dtype)


# ----------------------------------------------------------------------------
# Kernel 3: pooler (tanh) + dropout(identity in eval) + classifier head.
#           Output columns padded to 128 for a lane-dense store.
# ----------------------------------------------------------------------------
def _pool_classify_kernel(cls_ref, wp_ref, bp_ref, wo_ref, bo_ref, o_ref):
    pooled = jnp.tanh(jnp.dot(cls_ref[...].astype(jnp.bfloat16), wp_ref[...],
                              preferred_element_type=jnp.float32) + bp_ref[...])
    logits = jnp.dot(pooled.astype(jnp.bfloat16), wo_ref[...],
                     preferred_element_type=jnp.float32) + bo_ref[...]
    o_ref[...] = logits.astype(o_ref.dtype)


# ----------------------------------------------------------------------------
# Encoder wrapper: grid = (layers,), shared weights VMEM-resident across layers
# ----------------------------------------------------------------------------
def albert_encoder(x0, add_mask, enc_w, *, layers, B, S, nH, dh, eps=1e-12):
    H = nH * dh
    inputs = (x0, add_mask) + enc_w
    kernel = functools.partial(_encoder_layer_kernel, B=B, S=S, nH=nH, dh=dh, eps=eps)
    return pl.pallas_call(
        kernel,
        out_shape=jax.ShapeDtypeStruct((B * S, H), jnp.float32),
        grid=(layers,),
        in_specs=[_whole(a.shape) for a in inputs],
        out_specs=_whole((B * S, H)),
        scratch_shapes=[pltpu.VMEM((B * S, H), jnp.float32)],
        compiler_params=pltpu.CompilerParams(dimension_semantics=("arbitrary",)),
    )(*inputs)


# ----------------------------------------------------------------------------
# Parameters (deterministic synthetic init — shapes follow an ALBERT config)
# ----------------------------------------------------------------------------
def init_params(key, cfg):
    keys = iter(jax.random.split(key, 32))

    def rnd(shape):
        return jax.random.normal(next(keys), shape, jnp.float32) * 0.02

    H, E, I, C = cfg["hidden"], cfg["emb"], cfg["inter"], cfg["n_classes"]
    p = {
        # embeddings (ALBERT factorized: embedding_size E -> hidden H)
        "word_emb": rnd((cfg["vocab"], E)),
        "pos_emb": rnd((cfg["max_pos"], E)),
        "type_emb": rnd((2, E)),
        "emb_ln_g": jnp.ones((E,), jnp.float32),
        "emb_ln_b": jnp.zeros((E,), jnp.float32),
        "emb_proj_w": rnd((E, H)),
        "emb_proj_b": jnp.zeros((H,), jnp.float32),
        # single shared transformer layer (ALBERT parameter sharing)
        "q_w": rnd((H, H)), "q_b": jnp.zeros((H,), jnp.float32),
        "k_w": rnd((H, H)), "k_b": jnp.zeros((H,), jnp.float32),
        "v_w": rnd((H, H)), "v_b": jnp.zeros((H,), jnp.float32),
        "attn_out_w": rnd((H, H)), "attn_out_b": jnp.zeros((H,), jnp.float32),
        "attn_ln_g": jnp.ones((H,), jnp.float32), "attn_ln_b": jnp.zeros((H,), jnp.float32),
        "ffn_w": rnd((H, I)), "ffn_b": jnp.zeros((I,), jnp.float32),
        "ffn_out_w": rnd((I, H)), "ffn_out_b": jnp.zeros((H,), jnp.float32),
        "ffn_ln_g": jnp.ones((H,), jnp.float32), "ffn_ln_b": jnp.zeros((H,), jnp.float32),
        # pooler + classification head (self.out = nn.Linear(hidden, n_classes))
        "pool_w": rnd((H, H)), "pool_b": jnp.zeros((H,), jnp.float32),
        "out_w": rnd((H, C)), "out_b": jnp.zeros((C,), jnp.float32),
    }
    return p


# ----------------------------------------------------------------------------
# Forward pass == NewsSubjectClassifier.forward(input_ids, attention_mask)
# ----------------------------------------------------------------------------
def news_subject_classifier(params, input_ids, attention_mask, cfg):
    B, S = input_ids.shape
    H, E, nH, I, C = cfg["hidden"], cfg["emb"], cfg["heads"], cfg["inter"], cfg["n_classes"]
    dh = H // nH
    scale = 1.0 / math.sqrt(dh)

    # --- trace-time weight packing (once): fused QKV, folded scale, bf16 matmul weights ---
    qkv_w = jnp.concatenate(
        [params["q_w"] * scale, params["k_w"], params["v_w"]], axis=1).astype(jnp.bfloat16)
    qkv_b = jnp.concatenate(
        [params["q_b"] * scale, params["k_b"], params["v_b"]]).reshape(1, 3 * H)
    enc_w = (
        qkv_w, qkv_b,
        params["attn_out_w"].astype(jnp.bfloat16), params["attn_out_b"].reshape(1, H),
        params["attn_ln_g"].reshape(1, H), params["attn_ln_b"].reshape(1, H),
        params["ffn_w"].astype(jnp.bfloat16), params["ffn_b"].reshape(1, I),
        params["ffn_out_w"].astype(jnp.bfloat16), params["ffn_out_b"].reshape(1, H),
        params["ffn_ln_g"].reshape(1, H), params["ffn_ln_b"].reshape(1, H),
    )

    # --- embeddings (gathers are glue in plain JAX), then fused LN + E->H projection ---
    positions = jnp.arange(S)
    emb = (params["word_emb"][input_ids]
           + params["pos_emb"][positions][None, :, :]
           + params["type_emb"][0][None, None, :]).reshape(B * S, E)
    x = _single_call(
        functools.partial(_embed_kernel, eps=1e-12),
        jax.ShapeDtypeStruct((B * S, H), jnp.float32),
        emb,
        params["emb_ln_g"].reshape(1, E), params["emb_ln_b"].reshape(1, E),
        params["emb_proj_w"].astype(jnp.bfloat16), params["emb_proj_b"].reshape(1, H),
    )

    # additive attention mask [B, 1, S]: 0 on real tokens, -1e4 on padding (no nH broadcast)
    add_mask = (1.0 - attention_mask.astype(jnp.float32))[:, None, :] * -10000.0

    # --- ALBERT encoder: shared layer iterated on the grid, weights stay VMEM-resident ---
    x = albert_encoder(x, add_mask, enc_w,
                       layers=cfg["layers"], B=B, S=S, nH=nH, dh=dh)

    # --- pooler + dropout(identity in eval) + classifier (lane-padded to 128 columns) ---
    cls = x.reshape(B, S, H)[:, 0, :]                       # [B, H]
    c_pad = 128
    out_w = jnp.zeros((H, c_pad), jnp.float32).at[:, :C].set(params["out_w"])
    out_b = jnp.zeros((1, c_pad), jnp.float32).at[:, :C].set(params["out_b"][None, :])
    logits_pad = _single_call(
        _pool_classify_kernel,
        jax.ShapeDtypeStruct((B, c_pad), jnp.float32),
        cls,
        params["pool_w"].astype(jnp.bfloat16), params["pool_b"].reshape(1, H),
        out_w.astype(jnp.bfloat16), out_b,
    )
    return logits_pad[:, :C]


# ----------------------------------------------------------------------------
if __name__ == "__main__":
    cfg = dict(vocab=100, emb=16, hidden=32, heads=4, inter=64,
               layers=2, max_pos=16, n_classes=3)

    key = jax.random.PRNGKey(0)
    pkey, ikey = jax.random.split(key)
    params = init_params(pkey, cfg)

    B, S = 2, 8
    input_ids = jax.random.randint(ikey, (B, S), 0, cfg["vocab"], dtype=jnp.int32)
    attention_mask = jnp.ones((B, S), dtype=jnp.int32)

    logits = news_subject_classifier(params, input_ids, attention_mask, cfg)
    jax.block_until_ready(logits)
    assert logits.shape == (B, cfg["n_classes"])
    print("KERNEL_OK")
</pallas_src>

<mosaic_0001>
module attributes {stable_mosaic.version = 11 : i64} {
  func.func @_embed_kernel(%arg0: i32, %arg1: memref<16x16xf32, #tpu.memory_space<vmem>>, %arg2: memref<1x16xf32, #tpu.memory_space<vmem>>, %arg3: memref<1x16xf32, #tpu.memory_space<vmem>>, %arg4: memref<16x32xbf16, #tpu.memory_space<vmem>>, %arg5: memref<1x32xf32, #tpu.memory_space<vmem>>, %arg6: memref<16x32xf32, #tpu.memory_space<vmem>>) attributes {dimension_semantics = [#tpu.dimension_semantics<arbitrary>], iteration_bounds = array<i64: 1>, scalar_prefetch = 0 : i64, scratch_operands = 0 : i64, tpu.core_type = #tpu.core_type<tc>, window_params = [{pipeline_mode = #tpu.pipeline_mode<synchronous>, transform_indices = @transform_0, window_bounds = array<i64: 16, 16>}, {pipeline_mode = #tpu.pipeline_mode<synchronous>, transform_indices = @transform_1, window_bounds = array<i64: 1, 16>}, {pipeline_mode = #tpu.pipeline_mode<synchronous>, transform_indices = @transform_2, window_bounds = array<i64: 1, 16>}, {pipeline_mode = #tpu.pipeline_mode<synchronous>, transform_indices = @transform_3, window_bounds = array<i64: 16, 32>}, {pipeline_mode = #tpu.pipeline_mode<synchronous>, transform_indices = @transform_4, window_bounds = array<i64: 1, 32>}, {pipeline_mode = #tpu.pipeline_mode<synchronous>, transform_indices = @transform_5, window_bounds = array<i64: 16, 32>}]} {
    %c0 = arith.constant 0 : index
    %c0_0 = arith.constant 0 : index
    %0 = vector.load %arg1[%c0, %c0_0] : memref<16x16xf32, #tpu.memory_space<vmem>>, vector<16x16xf32>
    %c0_1 = arith.constant 0 : index
    %c0_2 = arith.constant 0 : index
    %1 = vector.load %arg2[%c0_1, %c0_2] : memref<1x16xf32, #tpu.memory_space<vmem>>, vector<1x16xf32>
    %c0_3 = arith.constant 0 : index
    %c0_4 = arith.constant 0 : index
    %2 = vector.load %arg3[%c0_3, %c0_4] : memref<1x16xf32, #tpu.memory_space<vmem>>, vector<1x16xf32>
    %cst = arith.constant dense<0.000000e+00> : vector<16xf32>
    %3 = vector.multi_reduction <add>, %0, %cst [1] : vector<16x16xf32> to vector<16xf32>
    %4 = vector.shape_cast %3 : vector<16xf32> to vector<16x1xf32>
    %cst_5 = arith.constant 1.600000e+01 : f32
    %5 = vector.broadcast %cst_5 : f32 to vector<16x1xf32>
    %6 = arith.divf %4, %5 : vector<16x1xf32>
    %7 = vector.broadcast %6 : vector<16x1xf32> to vector<16x16xf32>
    %8 = arith.subf %0, %7 : vector<16x16xf32>
    %9 = arith.mulf %8, %8 : vector<16x16xf32>
    %cst_6 = arith.constant dense<0.000000e+00> : vector<16xf32>
    %10 = vector.multi_reduction <add>, %9, %cst_6 [1] : vector<16x16xf32> to vector<16xf32>
    %11 = vector.shape_cast %10 : vector<16xf32> to vector<16x1xf32>
    %cst_7 = arith.constant 1.600000e+01 : f32
    %12 = vector.broadcast %cst_7 : f32 to vector<16x1xf32>
    %13 = arith.divf %11, %12 : vector<16x1xf32>
    %14 = vector.broadcast %6 : vector<16x1xf32> to vector<16x16xf32>
    %15 = arith.subf %0, %14 : vector<16x16xf32>
    %cst_8 = arith.constant 9.99999996E-13 : f32
    %16 = vector.broadcast %cst_8 : f32 to vector<16x1xf32>
    %17 = arith.addf %13, %16 : vector<16x1xf32>
    %18 = math.rsqrt %17 : vector<16x1xf32>
    %19 = vector.broadcast %18 : vector<16x1xf32> to vector<16x16xf32>
    %20 = arith.mulf %15, %19 : vector<16x16xf32>
    %21 = vector.broadcast %1 : vector<1x16xf32> to vector<16x16xf32>
    %22 = arith.mulf %20, %21 : vector<16x16xf32>
    %23 = vector.broadcast %2 : vector<1x16xf32> to vector<16x16xf32>
    %24 = arith.addf %22, %23 : vector<16x16xf32>
    %25 = arith.truncf %24 : vector<16x16xf32> to vector<16x16xbf16>
    %c0_9 = arith.constant 0 : index
    %c0_10 = arith.constant 0 : index
    %26 = vector.load %arg4[%c0_9, %c0_10] : memref<16x32xbf16, #tpu.memory_space<vmem>>, vector<16x32xbf16>
    %cst_11 = arith.constant dense<0.000000e+00> : vector<16x32xf32>
    %27 = tpu.matmul %25, %26, %cst_11 {dimension_numbers = #tpu.dot_dimension_numbers<[1], [0], [0], [1], [0, 0, 1, 1], [], []>} : vector<16x16xbf16>, vector<16x32xbf16>, vector<16x32xf32> -> vector<16x32xf32>
    %c0_12 = arith.constant 0 : index
    %c0_13 = arith.constant 0 : index
    %28 = vector.load %arg5[%c0_12, %c0_13] : memref<1x32xf32, #tpu.memory_space<vmem>>, vector<1x32xf32>
    %29 = vector.broadcast %28 : vector<1x32xf32> to vector<16x32xf32>
    %30 = arith.addf %27, %29 : vector<16x32xf32>
    %c0_14 = arith.constant 0 : index
    %c0_15 = arith.constant 0 : index
    %31 = vector.load %arg6[%c0_14, %c0_15] : memref<16x32xf32, #tpu.memory_space<vmem>>, vector<16x32xf32>
    tpu.vector_store %arg6[%c0_14, %c0_15], %30 {strides = array<i32>} : memref<16x32xf32, #tpu.memory_space<vmem>>, vector<16x32xf32>,
    return
  }
  func.func @transform_0(%arg0: i32) -> (i32, i32) {
    %c0_i32 = arith.constant 0 : i32
    %c0_i32_0 = arith.constant 0 : i32
    %c0_i32_1 = arith.constant 0 : i32
    return %c0_i32, %c0_i32_0 : i32, i32
  }
  func.func @transform_1(%arg0: i32) -> (i32, i32) {
    %c0_i32 = arith.constant 0 : i32
    %c0_i32_0 = arith.constant 0 : i32
    %c0_i32_1 = arith.constant 0 : i32
    return %c0_i32, %c0_i32_0 : i32, i32
  }
  func.func @transform_2(%arg0: i32) -> (i32, i32) {
    %c0_i32 = arith.constant 0 : i32
    %c0_i32_0 = arith.constant 0 : i32
    %c0_i32_1 = arith.constant 0 : i32
    return %c0_i32, %c0_i32_0 : i32, i32
  }
  func.func @transform_3(%arg0: i32) -> (i32, i32) {
    %c0_i32 = arith.constant 0 : i32
    %c0_i32_0 = arith.constant 0 : i32
    %c0_i32_1 = arith.constant 0 : i32
    return %c0_i32, %c0_i32_0 : i32, i32
  }
  func.func @transform_4(%arg0: i32) -> (i32, i32) {
    %c0_i32 = arith.constant 0 : i32
    %c0_i32_0 = arith.constant 0 : i32
    %c0_i32_1 = arith.constant 0 : i32
    return %c0_i32, %c0_i32_0 : i32, i32
  }
  func.func @transform_5(%arg0: i32) -> (i32, i32) {
    %c0_i32 = arith.constant 0 : i32
    %c0_i32_0 = arith.constant 0 : i32
    %c0_i32_1 = arith.constant 0 : i32
    return %c0_i32, %c0_i32_0 : i32, i32
  }
}

</mosaic_0001>

<bundles_post_ra>
// kernel: tpu_custom_call.1
= control target key start
LH: loop header
LB: loop body
LE: loop exit
PB: predicated region body
PF: predicated region fallthrough
CT: control target
= control target key end

     0   :  { %10 = vsyncpa [#allocation3], 0  ;;  %s340_s0 = inlined_call_operand.hbm [shape: f32[16,16], index: 0, kind: input, shape index: {}]   ;;  %s341_s1 = inlined_call_operand.vmem [shape: f32[1,16], index: 1, kind: input, shape index: {}]   ;;  %s342_s2 = inlined_call_operand.vmem [shape: f32[1,16], index: 2, kind: input, shape index: {}]   ;;  %s343_s3 = inlined_call_operand.hbm [shape: bf16[16,32], index: 3, kind: input, shape index: {}]   ;;  %s344_s4 = inlined_call_operand.vmem [shape: f32[1,32], index: 4, kind: input, shape index: {}]   ;;  %s345_s5 = inlined_call_operand.hbm [shape: f32[16,32], index: 5, kind: output, shape index: {}]  }
   0x1   :  { %11 = vsyncpa [#allocation6], 0 }
   0x2   :  { %12 = vsyncpa [#allocation4], 0  ;;  %s272_s18 = smov [#allocation2]  }
   0x3   :  { %s18_s19 = sshll.u32 %s272_s18, 4  ;;  %s19_s19 = int_to_ptr.vmem [resolvable:$true] %s18_s19 }
   0x4   :  { %s214_s20 = scalar_lea.vmem %s19_s19, 256  ;;  %p219_p1 = scmp.lt.s32.totalorder %s19_s19, %s19_s19 }
   0x5   :  { %p215_p0 = scmp.ne.s32.totalorder %s19_s19, %s214_s20  ;;  %p220_p2 = scmp.lt.s32.totalorder %s214_s20, %s214_s20 }
   0x7   :  { %p221_p3 = por %p220_p2, %p219_p1 }
   0x9   :  { %p222_p4 = pnand %p221_p3, %p215_p0 }
   0xb   :  { %225 = shalt.err (!%p222_p4)
}
   0xc   :  { %s273_s21 = smov 128   ;;  %s274_s22 = smov 8  }
   0xd   :  { %24 = dma.hbm_to_vmem [thread:$0]  %s340_s0, 256, %s19_s19, [#allocation3], %s273_s21, %s273_s21, %s274_s22  }
   0xe   :  { %s275_s25 = smov [#allocation5]  }
   0xf   :  { %s34_s26 = sshll.u32 %s275_s25, 4  ;;  %s35_s26 = int_to_ptr.vmem [resolvable:$true] %s34_s26 }
  0x10   :  { %s234_s27 = scalar_lea.vmem %s35_s26, 128  ;;  %p239_p6 = scmp.lt.s32.totalorder %s35_s26, %s35_s26 }
  0x11   :  { %p235_p5 = scmp.ne.s32.totalorder %s35_s26, %s234_s27  ;;  %p240_p7 = scmp.lt.s32.totalorder %s234_s27, %s234_s27 }
  0x13   :  { %p241_p8 = por %p240_p7, %p239_p6 }
  0x15   :  { %p242_p9 = pnand %p241_p8, %p235_p5 }
  0x17   :  { %245 = shalt.err (!%p242_p9)
}
  0x18   :  { %s276_s28 = smov 64   ;;  %s277_s29 = smov 4  }
  0x19   :  { %40 = dma.hbm_to_vmem [thread:$0]  %s343_s3, 128, %s35_s26, [#allocation6], %s276_s28, %s276_s28, %s277_s29  }
  0x1a   :  { %266 = dma.done.wait [#allocation3], 256  }
  0x1b   :  { %267 = vsyncadd [#allocation3], 4294967040 }
  0x1c   :  { %268 = dma.done.wait [#allocation6], 128  }
  0x1d   :  { %269 = vsyncadd [#allocation6], 4294967168  ;;  %vm54_vm0 = vcmask 130048   ;;  %v50_v0 = vld [vmem:[#allocation2] sm:$0xff]  ;;  %v51_v1 = vld [vmem:[#allocation2 + $0x8] sm:$0xff]  ;;  %v278_v15 = vmov 0.0  }
  0x1e   :  { %v55_v2 = vsel %vm54_vm0, %v50_v0, 0.0  ;;  %v58_v3 = vsel %vm54_vm0, %v51_v1, 0.0  ;;  %v201_v14 = vld [vmem:[#allocation5] sm:$0xff]   ;;  %186 = vmatprep.subr.bf16.mxu0 %v278_v15  ;;  %vm279_vm1 = vmmov 0   ;;  %v179_v24 = vld [vmem:[%s341_s1] ss:$0 sm:$0xff] }
  0x1f   :  { %56 = vadd.xlane.f32.xlu0 %v55_v2  ;;  %188 = vmatprep.mubr.msk.bf16.mxu0 %vm279_vm1, %v278_v15  ;;  %v180_v28 = vld [vmem:[%s342_s2] ss:$0 sm:$0xff]  ;;  %vm158_vm2 = vcmask 261120   ;;  %s280_s1 = smov [#allocation7]  }
  0x20   :  { %187 = vmatpush3.bf16.msra.mxu0 %v201_v14  ;;  %v181_v33 = vld [vmem:[%s344_s4] ss:$0 sm:$0xff]  ;;  %s166_s11 = sshll.u32 %s280_s1, 4  ;;  %s167_s11 = int_to_ptr.vmem [resolvable:$true] %s166_s11 }
  0x21   :  { %s246_s2 = scalar_lea.vmem %s167_s11, 256  ;;  %p251_p11 = scmp.lt.s32.totalorder %s167_s11, %s167_s11 }
  0x22   :  { %p247_p10 = scmp.ne.s32.totalorder %s167_s11, %s246_s2  ;;  %p252_p12 = scmp.lt.s32.totalorder %s246_s2, %s246_s2 }
  0x23   :  { %59 = vadd.xlane.f32.xlu0 %v58_v3 }
  0x24   :  { %p253_p13 = por %p252_p12, %p251_p11 }
  0x26   :  { %p254_p0 = pnand %p253_p13, %p247_p10 }
  0xa8   :  { %v57_v4 = vpop.xlane.xlu0 %56 }
  0xa9   :  { %v62_v5 = vmul.f32 0.0625, %v57_v4 }
  0xab   :  { %v64_v6 = vsub.f32 %v50_v0, %v62_v5 }
  0xac   :  { %v60_v7 = vpop.xlane.xlu0 %59 }
  0xad   :  { %v63_v8 = vmul.f32 0.0625, %v60_v7  ;;  %v66_v9 = vmul.f32 %v64_v6, %v64_v6 }
  0xaf   :  { %v65_v10 = vsub.f32 %v51_v1, %v63_v8  ;;  %v68_v11 = vsel %vm54_vm0, %v66_v9, 0.0 }
  0xb0   :  { %69 = vadd.xlane.f32.xlu1 %v68_v11 }
  0xb1   :  { %v67_v12 = vmul.f32 %v65_v10, %v65_v10 }
  0xb3   :  { %v71_v13 = vsel %vm54_vm0, %v67_v12, 0.0 }
  0xb4   :  { %72 = vadd.xlane.f32.xlu1 %v71_v13 }
 0x139   :  { %v70_v16 = vpop.xlane.xlu1 %69 }
 0x13a   :  { %v74_v17 = vmul.f32 0.0625, %v70_v16 }
 0x13c   :  { %v76_v18 = vadd.f32 1e-12, %v74_v17 }
 0x13d   :  { %v73_v19 = vpop.xlane.xlu1 %72 }
 0x13e   :  { %202 = vrsqrt.f32 %v76_v18  ;;  %v75_v20 = vmul.f32 0.0625, %v73_v19 }
 0x140   :  { %v77_v21 = vadd.f32 1e-12, %v75_v20 }
 0x142   :  { %204 = vrsqrt.f32 %v77_v21 }
 0x14b   :  { %v203_v22 = vpop.eup %202 }
 0x14c   :  { %v80_v23 = vmul.f32 %v203_v22, %v64_v6 }
 0x14e   :  { %v88_v27 = vmul.f32 %v179_v24, %v80_v23 }
 0x14f   :  { %v205_v25 = vpop.eup %204 }
 0x150   :  { %v81_v26 = vmul.f32 %v205_v25, %v65_v10  ;;  %v96_v30 = vadd.f32 %v180_v28, %v88_v27 }
 0x152   :  { %v89_v29 = vmul.f32 %v179_v24, %v81_v26 }
 0x154   :  { %v97_v31 = vadd.f32 %v180_v28, %v89_v29 }
 0x156   :  { %v98_v32 = vpack.c.bf16 %v97_v31, %v96_v30 }
 0x158   :  { %189 = vmatmul.mubr.msk.bf16.vlgmr.msra.gmra.mxu0 %vm54_vm0, %v98_v32 }
 0x218   :  { %v151_v34 = vpop.f32.mrf.mxu0 }
 0x219   :  { %v152_v35 = vadd.f32 %v181_v33, %v151_v34 }
 0x21a   :  { %v190_v36 = vpop.f32.mrf.mxu0 }
 0x21b   :  { %159 = vst.msk [vmem:[#allocation7] sm:$0xff] %vm158_vm2, %v152_v35 }
 0x21c   :  { %v154_v37 = vpop.f32.mrf.mxu0 }
 0x21d   :  { %v155_v38 = vadd.f32 %v181_v33, %v154_v37 }
 0x21e   :  { %v191_v39 = vpop.f32.mrf.mxu0 }
 0x21f   :  { %160 = vst.msk [vmem:[#allocation7 + $0x8] sm:$0xff] %vm158_vm2, %v155_v38 }
 0x220   :  { %257 = shalt.err (!%p254_p0)
}
 0x221   :  { %172 = dma.vmem_to_hbm [thread:$0]  %s167_s11, 256, %s345_s5, [#allocation4], %s273_s21, %s273_s21, %s274_s22  }
 0x222   :  { %270 = dma.done.wait [#allocation4], 256  }
 0x223   :  { %271 = vsyncadd [#allocation4], 4294967040 }
 0x224   :  { %176 = vsyncpa [#allocation3], 1 }
 0x225   :  { %177 = vsyncpa [#allocation6], 1 }
 0x226   :  { %178 = vsyncpa [#allocation4], 1 }

</bundles_post_ra>
